<compile_context>
chip_gen: v7x
topology: tpu7x:2x2x1
jax: 0.10.0
libtpu: 0.0.40
codegen_flags: <defaults>
</compile_context>

<pallas_src>
import functools

import jax
import jax.numpy as jnp
from jax import lax
from jax.experimental import pallas as pl
from jax.experimental.pallas import tpu as pltpu

BN_EPS = 1e-5


def _vmem_capacity_bytes():
    """Physical VMEM per TensorCore; falls back to the smallest current gen (v7x)."""
    try:
        cap = getattr(pltpu.get_tpu_info(), "vmem_capacity_bytes", None)
        if cap:
            return int(cap)
    except Exception:
        pass
    return 64 * 1024 * 1024


def _pick_hw_tile(hw_pad, max_tile_tokens):
    """Largest multiple of 128 that divides hw_pad and is <= max_tile_tokens."""
    m = hw_pad // 128
    d_max = max(1, min(m, max_tile_tokens // 128))
    for d in range(d_max, 0, -1):
        if m % d == 0:
            return 128 * d
    return 128


# ---- two-pass, pass 1: per-batch partial sum / sum-of-squares of h=conv1(x) --
def _stats_kernel(x_ref, w1t_ref, b1_ref, sum_ref, sumsq_ref):
    @pl.when(pl.program_id(1) == 0)
    def _():
        sum_ref[...] = jnp.zeros_like(sum_ref)
        sumsq_ref[...] = jnp.zeros_like(sumsq_ref)

    x = x_ref[0]                                           # (C, tHW): tokens on lanes
    h = jnp.dot(w1t_ref[...], x, preferred_element_type=jnp.float32) + b1_ref[...]
    sum_ref[0] += jnp.sum(h, axis=1, keepdims=True)
    sumsq_ref[0] += jnp.sum(h * h, axis=1, keepdims=True)


# ---- two-pass, pass 2: y = conv2(relu(conv1_with_folded_BN(x))) per tile -----
def _apply_kernel(x_ref, w1t_ref, b1_ref, w2t_ref, b2_ref, o_ref):
    x = x_ref[0]                                           # (C, tHW)
    h = jnp.dot(w1t_ref[...], x, preferred_element_type=jnp.float32) + b1_ref[...]
    h = jnp.maximum(h, 0.0)
    y = jnp.dot(w2t_ref[...], h, preferred_element_type=jnp.float32) + b2_ref[...]
    o_ref[0] = y.astype(o_ref.dtype)


# ---- fused single-kernel path: x resident in VMEM ----------------------------
def _fused_kernel(x_ref, w1t_ref, b1_ref, gamma_ref, beta_ref, w2t_ref, b2_ref,
                  o_ref, sum_sc, sumsq_sc, *, n_pad_total, cnt_valid):
    n_batch = x_ref.shape[0]                               # static

    sum_sc[...] = jnp.zeros_like(sum_sc)
    sumsq_sc[...] = jnp.zeros_like(sumsq_sc)

    @pl.loop(0, n_batch)
    def _(n):
        x = x_ref[n]                                       # (C, HWp)
        h = jnp.dot(w1t_ref[...], x, preferred_element_type=jnp.float32) + b1_ref[...]
        sum_sc[...] += jnp.sum(h, axis=1, keepdims=True)
        sumsq_sc[...] += jnp.sum(h * h, axis=1, keepdims=True)

    b1 = b1_ref[...]
    # zero pad tokens contribute exactly b1 / b1^2 per channel -> exact correction
    s = sum_sc[...] - jnp.float32(n_pad_total) * b1
    ss = sumsq_sc[...] - jnp.float32(n_pad_total) * (b1 * b1)
    inv_cnt = jnp.float32(1.0 / cnt_valid)
    mean = s * inv_cnt
    var = jnp.maximum(ss * inv_cnt - mean * mean, 0.0)     # biased (train-mode) var
    scale = gamma_ref[...] * lax.rsqrt(var + BN_EPS)       # (hidden, 1), EUP
    shift = beta_ref[...] - mean * scale
    w1_eff = w1t_ref[...] * scale                          # fold BN into conv1
    b1_eff = b1 * scale + shift

    @pl.loop(0, n_batch)
    def _(n):
        x = x_ref[n]
        h = jnp.maximum(
            jnp.dot(w1_eff, x, preferred_element_type=jnp.float32) + b1_eff, 0.0)
        y = jnp.dot(w2t_ref[...], h, preferred_element_type=jnp.float32) + b2_ref[...]
        o_ref[n] = y.astype(o_ref.dtype)


def structural_tail(x_nchw, w1t, b1, gamma, beta, w2t, b2, *, force_two_pass=False):
    """StructuralTail forward (PyTorch train-mode BatchNorm batch statistics).

    x_nchw : (N, C, H, W) f32
    w1t    : (hidden, C)   conv1 weight (out_ch, in_ch)
    b1     : (hidden, 1)   conv1 bias
    gamma  : (hidden, 1)   BN weight
    beta   : (hidden, 1)   BN bias
    w2t    : (P, hidden)   conv2 weight (out_ch, in_ch)
    b2     : (P, 1)        conv2 bias
    returns (N, P, H, W) f32
    """
    # TODO(synk): PyTorch train-mode BatchNorm also updates running_mean/running_var
    # (unbiased variance); only the forward output is produced here.
    N, C, H, W = x_nchw.shape
    hidden = w1t.shape[0]
    P = w2t.shape[0]
    HW = H * W

    # ---- generation-aware VMEM budgeting -------------------------------------
    cap = _vmem_capacity_bytes()                      # 64 MiB v7x, 128 MiB v5e/v6e
    tile_budget = min(cap // 4, 16 * 1024 * 1024)     # streamed-tile / fused budget
    vmem_limit = min(cap // 2, 64 * 1024 * 1024)      # raise v5e's 16 MiB default

    # ---- lane-dense token axis: pad H*W up to a multiple of 128 --------------
    hw_pad = ((HW + 127) // 128) * 128
    n_pad_per_img = hw_pad - HW
    n_pad_total = N * n_pad_per_img
    cnt_valid = N * HW

    x3 = x_nchw.reshape(N, C, HW)                     # pure reshape, no transpose
    if n_pad_per_img:
        x3 = jnp.pad(x3, ((0, 0), (0, 0), (0, n_pad_per_img)))

    # ---- fused path: x, output and temporaries all fit in VMEM ---------------
    fused_bytes = 4 * (N * hw_pad * (C + P) + 4 * hidden * hw_pad
                       + hidden * (C + 4) + P * (hidden + 1))
    if (not force_two_pass) and fused_bytes <= tile_budget:
        full0 = lambda a: pl.BlockSpec(a.shape, lambda: (0,) * a.ndim)
        out3 = pl.pallas_call(
            functools.partial(_fused_kernel, n_pad_total=n_pad_total,
                              cnt_valid=cnt_valid),
            in_specs=[full0(x3), full0(w1t), full0(b1), full0(gamma),
                      full0(beta), full0(w2t), full0(b2)],
            out_specs=pl.BlockSpec((N, P, hw_pad), lambda: (0, 0, 0)),
            out_shape=jax.ShapeDtypeStruct((N, P, hw_pad), jnp.float32),
            scratch_shapes=[pltpu.VMEM((hidden, 1), jnp.float32),
                            pltpu.VMEM((hidden, 1), jnp.float32)],
            compiler_params=pltpu.CompilerParams(vmem_limit_bytes=vmem_limit),
            cost_estimate=pl.CostEstimate(
                flops=2 * N * hw_pad * hidden * (2 * C + P) + 6 * N * hw_pad * hidden,
                transcendentals=hidden,
                bytes_accessed=4 * N * hw_pad * (C + P)),
        )(x3, w1t, b1, gamma, beta, w2t, b2)
    else:
        # ---- token-tile size from the VMEM budget -----------------------------
        # per-step footprint ~ 4*t*(2C + 2P) double-buffered x/out + ~3*hidden*t temps
        bytes_per_token = 4 * (2 * C + 2 * P + 3 * hidden)
        max_tile_tokens = max(128, tile_budget // bytes_per_token)
        t_hw = _pick_hw_tile(hw_pad, max_tile_tokens)
        n_t = hw_pad // t_hw
        grid = (N, n_t)

        x_spec = pl.BlockSpec((1, C, t_hw), lambda n, t: (n, 0, t))
        full = lambda a: pl.BlockSpec(a.shape, lambda n, t: (0,) * a.ndim)

        # ---- pass 1: per-batch partial first/second moments of conv1(x) -------
        stats_cost = pl.CostEstimate(
            flops=2 * N * hw_pad * C * hidden + 3 * N * hw_pad * hidden,
            transcendentals=0,
            bytes_accessed=4 * (N * C * hw_pad + hidden * (C + 1) + 2 * N * hidden),
        )
        h_sum_n, h_sumsq_n = pl.pallas_call(
            _stats_kernel,
            grid=grid,
            in_specs=[x_spec, full(w1t), full(b1)],
            out_specs=(
                pl.BlockSpec((1, hidden, 1), lambda n, t: (n, 0, 0)),
                pl.BlockSpec((1, hidden, 1), lambda n, t: (n, 0, 0)),
            ),
            out_shape=(
                jax.ShapeDtypeStruct((N, hidden, 1), jnp.float32),
                jax.ShapeDtypeStruct((N, hidden, 1), jnp.float32),
            ),
            compiler_params=pltpu.CompilerParams(
                dimension_semantics=("parallel", "arbitrary"),
                vmem_limit_bytes=vmem_limit),
            cost_estimate=stats_cost,
        )(x3, w1t, b1)

        # ---- fold BatchNorm (batch stats, biased var) into conv1 --------------
        h_sum = jnp.sum(h_sum_n, axis=0)                       # (hidden, 1)
        h_sumsq = jnp.sum(h_sumsq_n, axis=0)
        if n_pad_total:
            # zero pad tokens contribute exactly b1 / b1^2 per channel
            h_sum = h_sum - jnp.float32(n_pad_total) * b1
            h_sumsq = h_sumsq - jnp.float32(n_pad_total) * (b1 * b1)
        cnt = jnp.float32(cnt_valid)
        mean = h_sum / cnt
        var = jnp.maximum(h_sumsq / cnt - mean * mean, 0.0)
        scale = gamma * lax.rsqrt(var + BN_EPS)
        shift = beta - mean * scale
        w1_eff = w1t * scale                                   # (hidden, C)
        b1_eff = b1 * scale + shift                            # (hidden, 1)

        # ---- pass 2: tiled, lane-dense apply (parallel over N and tiles) ------
        apply_cost = pl.CostEstimate(
            flops=2 * N * hw_pad * (C * hidden + hidden * P),
            transcendentals=0,
            bytes_accessed=4 * (N * hw_pad * (C + P) + hidden * (C + 1)
                                + P * (hidden + 1)),
        )
        out3 = pl.pallas_call(
            _apply_kernel,
            grid=grid,
            in_specs=[x_spec, full(w1_eff), full(b1_eff), full(w2t), full(b2)],
            out_specs=pl.BlockSpec((1, P, t_hw), lambda n, t: (n, 0, t)),
            out_shape=jax.ShapeDtypeStruct((N, P, hw_pad), jnp.float32),
            compiler_params=pltpu.CompilerParams(
                dimension_semantics=("parallel", "parallel"),
                vmem_limit_bytes=vmem_limit),
            cost_estimate=apply_cost,
        )(x3, w1_eff, b1_eff, w2t, b2)

    if n_pad_per_img:
        out3 = out3[:, :, :HW]
    return out3.reshape(N, P, H, W)


def make_params(channels, projection_size, hidden_size, key):
    k1, k2, k3, k4 = jax.random.split(key, 4)
    # Conv2d-style (out_ch, in_ch) weights; biases as (out_ch, 1) columns.
    w1t = jax.random.normal(k1, (hidden_size, channels), jnp.float32) * (1.0 / channels) ** 0.5
    b1 = jax.random.normal(k2, (hidden_size, 1), jnp.float32) * 0.01
    gamma = jnp.ones((hidden_size, 1), jnp.float32)
    beta = jnp.zeros((hidden_size, 1), jnp.float32)
    w2t = jax.random.normal(k3, (projection_size, hidden_size), jnp.float32) * (1.0 / hidden_size) ** 0.5
    b2 = jax.random.normal(k4, (projection_size, 1), jnp.float32) * 0.01
    return w1t, b1, gamma, beta, w2t, b2


if __name__ == "__main__":
    key = jax.random.PRNGKey(0)
    kx1, kx2, kp = jax.random.split(key, 3)

    C, hidden_size, projection_size = 4, 32, 16
    params = make_params(C, projection_size, hidden_size, kp)
    w1t, b1, gamma, beta, w2t, b2 = params

    def reference(x):
        # Plain-JAX reference with PyTorch training-mode BN semantics.
        n, _, h_, w_ = x.shape
        xt = jnp.transpose(x, (0, 2, 3, 1)).reshape(-1, C)
        h = xt @ w1t.T + b1[:, 0]
        m = h.mean(0, keepdims=True)
        v = ((h - m) ** 2).mean(0, keepdims=True)          # biased variance
        h = (h - m) / jnp.sqrt(v + BN_EPS) * gamma[:, 0] + beta[:, 0]
        h = jnp.maximum(h, 0.0)
        y = h @ w2t.T + b2[:, 0]
        return y.reshape(n, h_, w_, projection_size).transpose(0, 3, 1, 2)

    fn = jax.jit(structural_tail, static_argnames="force_two_pass")

    # 1) small demo shape -> fused single-kernel path
    x = jax.random.normal(kx1, (2, C, 16, 16), jnp.float32)
    out = fn(x, *params)
    jax.block_until_ready(out)
    assert out.shape == (2, projection_size, 16, 16)
    ref = reference(x)
    assert jnp.allclose(out, ref, atol=2e-3, rtol=2e-3), float(jnp.max(jnp.abs(out - ref)))

    # 2) same inputs through the streaming two-pass path (per-batch partial stats)
    out2 = fn(x, *params, force_two_pass=True)
    jax.block_until_ready(out2)
    assert jnp.allclose(out2, ref, atol=2e-3, rtol=2e-3), float(jnp.max(jnp.abs(out2 - ref)))

    # 3) H*W not a multiple of 128 -> lane padding + exact stats correction
    x_odd = jax.random.normal(kx2, (2, C, 10, 12), jnp.float32)
    ref_odd = reference(x_odd)
    for two_pass in (False, True):
        out_odd = fn(x_odd, *params, force_two_pass=two_pass)
        jax.block_until_ready(out_odd)
        assert out_odd.shape == (2, projection_size, 10, 12)
        assert jnp.allclose(out_odd, ref_odd, atol=2e-3, rtol=2e-3), \
            float(jnp.max(jnp.abs(out_odd - ref_odd)))

    print("KERNEL_OK")
</pallas_src>

<mosaic_0001>
module attributes {stable_mosaic.version = 11 : i64} {
  func.func @_fused_kernel(%arg0: memref<2x4x256xf32, #tpu.memory_space<vmem>>, %arg1: memref<32x4xf32, #tpu.memory_space<vmem>>, %arg2: memref<32x1xf32, #tpu.memory_space<vmem>>, %arg3: memref<32x1xf32, #tpu.memory_space<vmem>>, %arg4: memref<32x1xf32, #tpu.memory_space<vmem>>, %arg5: memref<16x32xf32, #tpu.memory_space<vmem>>, %arg6: memref<16x1xf32, #tpu.memory_space<vmem>>, %arg7: memref<2x16x256xf32, #tpu.memory_space<vmem>>, %arg8: memref<32x1xf32, #tpu.memory_space<vmem>>, %arg9: memref<32x1xf32, #tpu.memory_space<vmem>>) attributes {dimension_semantics = [], scalar_prefetch = 0 : i64, scratch_operands = 2 : i64, tpu.core_type = #tpu.core_type<tc>} {
    %cst = arith.constant 0.000000e+00 : f32
    %0 = vector.broadcast %cst : f32 to vector<32x1xf32>
    %c0 = arith.constant 0 : index
    %c0_0 = arith.constant 0 : index
    %1 = vector.load %arg8[%c0, %c0_0] : memref<32x1xf32, #tpu.memory_space<vmem>>, vector<32x1xf32>
    tpu.vector_store %arg8[%c0, %c0_0], %0 {strides = array<i32>} : memref<32x1xf32, #tpu.memory_space<vmem>>, vector<32x1xf32>,
    %cst_1 = arith.constant 0.000000e+00 : f32
    %2 = vector.broadcast %cst_1 : f32 to vector<32x1xf32>
    %c0_2 = arith.constant 0 : index
    %c0_3 = arith.constant 0 : index
    %3 = vector.load %arg9[%c0_2, %c0_3] : memref<32x1xf32, #tpu.memory_space<vmem>>, vector<32x1xf32>
    tpu.vector_store %arg9[%c0_2, %c0_3], %2 {strides = array<i32>} : memref<32x1xf32, #tpu.memory_space<vmem>>, vector<32x1xf32>,
    %c0_i32 = arith.constant 0 : i32
    %c2_i32 = arith.constant 2 : i32
    %4 = arith.addi %c0_i32, %c2_i32 : i32
    %c1_i32 = arith.constant 1 : i32
    scf.for %arg10 = %c0_i32 to %4 step %c1_i32  : i32 {
      %c1_i32_27 = arith.constant 1 : i32
      %37 = arith.muli %arg10, %c1_i32_27 : i32
      %c0_i32_28 = arith.constant 0 : i32
      %38 = arith.addi %c0_i32_28, %37 : i32
      %39 = arith.index_cast %38 : i32 to index
      %c0_29 = arith.constant 0 : index
      %c0_30 = arith.constant 0 : index
      %40 = vector.load %arg0[%39, %c0_29, %c0_30] : memref<2x4x256xf32, #tpu.memory_space<vmem>>, vector<1x4x256xf32>
      %41 = vector.shape_cast %40 : vector<1x4x256xf32> to vector<4x256xf32>
      %c0_31 = arith.constant 0 : index
      %c0_32 = arith.constant 0 : index
      %42 = vector.load %arg1[%c0_31, %c0_32] : memref<32x4xf32, #tpu.memory_space<vmem>>, vector<32x4xf32>
      %cst_33 = arith.constant dense<0.000000e+00> : vector<32x256xf32>
      %43 = tpu.matmul %42, %41, %cst_33 {dimension_numbers = #tpu.dot_dimension_numbers<[1], [0], [0], [1], [0, 0, 1, 1], [], []>} : vector<32x4xf32>, vector<4x256xf32>, vector<32x256xf32> -> vector<32x256xf32>
      %c0_34 = arith.constant 0 : index
      %c0_35 = arith.constant 0 : index
      %44 = vector.load %arg2[%c0_34, %c0_35] : memref<32x1xf32, #tpu.memory_space<vmem>>, vector<32x1xf32>
      %45 = vector.broadcast %44 : vector<32x1xf32> to vector<32x256xf32>
      %46 = arith.addf %43, %45 : vector<32x256xf32>
      %c0_36 = arith.constant 0 : index
      %c0_37 = arith.constant 0 : index
      %47 = vector.load %arg8[%c0_36, %c0_37] : memref<32x1xf32, #tpu.memory_space<vmem>>, vector<32x1xf32>
      %cst_38 = arith.constant dense<0.000000e+00> : vector<32xf32>
      %48 = vector.multi_reduction <add>, %46, %cst_38 [1] : vector<32x256xf32> to vector<32xf32>
      %49 = vector.shape_cast %48 : vector<32xf32> to vector<32x1xf32>
      %50 = arith.addf %47, %49 : vector<32x1xf32>
      %c0_39 = arith.constant 0 : index
      %c0_40 = arith.constant 0 : index
      %51 = vector.load %arg8[%c0_39, %c0_40] : memref<32x1xf32, #tpu.memory_space<vmem>>, vector<32x1xf32>
      tpu.vector_store %arg8[%c0_39, %c0_40], %50 {strides = array<i32>} : memref<32x1xf32, #tpu.memory_space<vmem>>, vector<32x1xf32>,
      %c0_41 = arith.constant 0 : index
      %c0_42 = arith.constant 0 : index
      %52 = vector.load %arg9[%c0_41, %c0_42] : memref<32x1xf32, #tpu.memory_space<vmem>>, vector<32x1xf32>
      %53 = arith.mulf %46, %46 : vector<32x256xf32>
      %cst_43 = arith.constant dense<0.000000e+00> : vector<32xf32>
      %54 = vector.multi_reduction <add>, %53, %cst_43 [1] : vector<32x256xf32> to vector<32xf32>
      %55 = vector.shape_cast %54 : vector<32xf32> to vector<32x1xf32>
      %56 = arith.addf %52, %55 : vector<32x1xf32>
      %c0_44 = arith.constant 0 : index
      %c0_45 = arith.constant 0 : index
      %57 = vector.load %arg9[%c0_44, %c0_45] : memref<32x1xf32, #tpu.memory_space<vmem>>, vector<32x1xf32>
      tpu.vector_store %arg9[%c0_44, %c0_45], %56 {strides = array<i32>} : memref<32x1xf32, #tpu.memory_space<vmem>>, vector<32x1xf32>,
    }
    %c2_i32_4 = arith.constant 2 : i32
    %c0_5 = arith.constant 0 : index
    %c0_6 = arith.constant 0 : index
    %5 = vector.load %arg2[%c0_5, %c0_6] : memref<32x1xf32, #tpu.memory_space<vmem>>, vector<32x1xf32>
    %c0_7 = arith.constant 0 : index
    %c0_8 = arith.constant 0 : index
    %6 = vector.load %arg8[%c0_7, %c0_8] : memref<32x1xf32, #tpu.memory_space<vmem>>, vector<32x1xf32>
    %cst_9 = arith.constant 0.000000e+00 : f32
    %7 = vector.broadcast %cst_9 : f32 to vector<32x1xf32>
    %8 = arith.mulf %7, %5 : vector<32x1xf32>
    %9 = arith.subf %6, %8 : vector<32x1xf32>
    %c0_10 = arith.constant 0 : index
    %c0_11 = arith.constant 0 : index
    %10 = vector.load %arg9[%c0_10, %c0_11] : memref<32x1xf32, #tpu.memory_space<vmem>>, vector<32x1xf32>
    %11 = arith.mulf %5, %5 : vector<32x1xf32>
    %cst_12 = arith.constant 0.000000e+00 : f32
    %12 = vector.broadcast %cst_12 : f32 to vector<32x1xf32>
    %13 = arith.mulf %12, %11 : vector<32x1xf32>
    %14 = arith.subf %10, %13 : vector<32x1xf32>
    %cst_13 = arith.constant 0.001953125 : f32
    %15 = vector.broadcast %cst_13 : f32 to vector<32x1xf32>
    %16 = arith.mulf %9, %15 : vector<32x1xf32>
    %cst_14 = arith.constant 0.001953125 : f32
    %17 = vector.broadcast %cst_14 : f32 to vector<32x1xf32>
    %18 = arith.mulf %14, %17 : vector<32x1xf32>
    %19 = arith.mulf %16, %16 : vector<32x1xf32>
    %20 = arith.subf %18, %19 : vector<32x1xf32>
    %cst_15 = arith.constant 0.000000e+00 : f32
    %21 = vector.broadcast %cst_15 : f32 to vector<32x1xf32>
    %22 = arith.maximumf %20, %21 : vector<32x1xf32>
    %c0_16 = arith.constant 0 : index
    %c0_17 = arith.constant 0 : index
    %23 = vector.load %arg3[%c0_16, %c0_17] : memref<32x1xf32, #tpu.memory_space<vmem>>, vector<32x1xf32>
    %cst_18 = arith.constant 9.99999974E-6 : f32
    %24 = vector.broadcast %cst_18 : f32 to vector<32x1xf32>
    %25 = arith.addf %22, %24 : vector<32x1xf32>
    %26 = math.rsqrt %25 : vector<32x1xf32>
    %27 = arith.mulf %23, %26 : vector<32x1xf32>
    %c0_19 = arith.constant 0 : index
    %c0_20 = arith.constant 0 : index
    %28 = vector.load %arg4[%c0_19, %c0_20] : memref<32x1xf32, #tpu.memory_space<vmem>>, vector<32x1xf32>
    %29 = arith.mulf %16, %27 : vector<32x1xf32>
    %30 = arith.subf %28, %29 : vector<32x1xf32>
    %c0_21 = arith.constant 0 : index
    %c0_22 = arith.constant 0 : index
    %31 = vector.load %arg1[%c0_21, %c0_22] : memref<32x4xf32, #tpu.memory_space<vmem>>, vector<32x4xf32>
    %32 = vector.broadcast %27 : vector<32x1xf32> to vector<32x4xf32>
    %33 = arith.mulf %31, %32 : vector<32x4xf32>
    %34 = arith.mulf %5, %27 : vector<32x1xf32>
    %35 = arith.addf %34, %30 : vector<32x1xf32>
    %c0_i32_23 = arith.constant 0 : i32
    %c2_i32_24 = arith.constant 2 : i32
    %36 = arith.addi %c0_i32_23, %c2_i32_24 : i32
    %c1_i32_25 = arith.constant 1 : i32
    scf.for %arg10 = %c0_i32_23 to %36 step %c1_i32_25  : i32 {
      %c1_i32_27 = arith.constant 1 : i32
      %37 = arith.muli %arg10, %c1_i32_27 : i32
      %c0_i32_28 = arith.constant 0 : i32
      %38 = arith.addi %c0_i32_28, %37 : i32
      %39 = arith.index_cast %38 : i32 to index
      %c0_29 = arith.constant 0 : index
      %c0_30 = arith.constant 0 : index
      %40 = vector.load %arg0[%39, %c0_29, %c0_30] : memref<2x4x256xf32, #tpu.memory_space<vmem>>, vector<1x4x256xf32>
      %41 = vector.shape_cast %40 : vector<1x4x256xf32> to vector<4x256xf32>
      %cst_31 = arith.constant dense<0.000000e+00> : vector<32x256xf32>
      %42 = tpu.matmul %33, %41, %cst_31 {dimension_numbers = #tpu.dot_dimension_numbers<[1], [0], [0], [1], [0, 0, 1, 1], [], []>} : vector<32x4xf32>, vector<4x256xf32>, vector<32x256xf32> -> vector<32x256xf32>
      %43 = vector.broadcast %35 : vector<32x1xf32> to vector<32x256xf32>
      %44 = arith.addf %42, %43 : vector<32x256xf32>
      %cst_32 = arith.constant 0.000000e+00 : f32
      %45 = vector.broadcast %cst_32 : f32 to vector<32x256xf32>
      %46 = arith.maximumf %44, %45 : vector<32x256xf32>
      %c0_33 = arith.constant 0 : index
      %c0_34 = arith.constant 0 : index
      %47 = vector.load %arg5[%c0_33, %c0_34] : memref<16x32xf32, #tpu.memory_space<vmem>>, vector<16x32xf32>
      %cst_35 = arith.constant dense<0.000000e+00> : vector<16x256xf32>
      %48 = tpu.matmul %47, %46, %cst_35 {dimension_numbers = #tpu.dot_dimension_numbers<[1], [0], [0], [1], [0, 0, 1, 1], [], []>} : vector<16x32xf32>, vector<32x256xf32>, vector<16x256xf32> -> vector<16x256xf32>
      %c0_36 = arith.constant 0 : index
      %c0_37 = arith.constant 0 : index
      %49 = vector.load %arg6[%c0_36, %c0_37] : memref<16x1xf32, #tpu.memory_space<vmem>>, vector<16x1xf32>
      %50 = vector.broadcast %49 : vector<16x1xf32> to vector<16x256xf32>
      %51 = arith.addf %48, %50 : vector<16x256xf32>
      %52 = arith.index_cast %38 : i32 to index
      %c0_38 = arith.constant 0 : index
      %c0_39 = arith.constant 0 : index
      %53 = vector.load %arg7[%52, %c0_38, %c0_39] : memref<2x16x256xf32, #tpu.memory_space<vmem>>, vector<1x16x256xf32>
      %54 = vector.shape_cast %53 : vector<1x16x256xf32> to vector<16x256xf32>
      %55 = vector.shape_cast %51 : vector<16x256xf32> to vector<1x16x256xf32>
      tpu.vector_store %arg7[%52, %c0_38, %c0_39], %55 {strides = array<i32>} : memref<2x16x256xf32, #tpu.memory_space<vmem>>, vector<1x16x256xf32>,
    }
    %c2_i32_26 = arith.constant 2 : i32
    return
  }
}

</mosaic_0001>

<bundles_post_ra>
// kernel: structural_tail.1
= control target key start
LH: loop header
LB: loop body
LE: loop exit
PB: predicated region body
PF: predicated region fallthrough
CT: control target
= control target key end

     0   :  { %vm26_vm0 = vcmask 7168   ;;  %v713_v0 = vmov 0.0   ;;  %s767_s24 = smov 0   ;;  %s955_s0 = inlined_call_operand.vmem [shape: f32[2,4,256], index: 0, kind: input, shape index: {}]   ;;  %s956_s1 = inlined_call_operand.vmem [shape: f32[32,4], index: 1, kind: input, shape index: {}]   ;;  %s957_s2 = inlined_call_operand.vmem [shape: f32[32,1], index: 2, kind: input, shape index: {}]   ;;  %s958_s3 = inlined_call_operand.vmem [shape: f32[32,1], index: 3, kind: input, shape index: {}]   ;;  %s959_s4 = inlined_call_operand.vmem [shape: f32[32,1], index: 4, kind: input, shape index: {}]   ;;  %s960_s5 = inlined_call_operand.vmem [shape: f32[16,32], index: 5, kind: input, shape index: {}]   ;;  %s961_s6 = inlined_call_operand.vmem [shape: f32[16,1], index: 6, kind: input, shape index: {}]   ;;  %s962_s7 = inlined_call_operand.vmem [shape: f32[2,16,256], index: 7, kind: output, shape index: {}]  }
   0x1   :  { %27 = vst.msk [vmem:[#allocation2] sm:$0xff] %vm26_vm0, %v713_v0  ;;  %28 = vst.msk [vmem:[#allocation2 + $0x8] sm:$0xff] %vm26_vm0, %v713_v0 }
   0x2   :  { %29 = vst.msk [vmem:[#allocation2 + $0x10] sm:$0xff] %vm26_vm0, %v713_v0  ;;  %30 = vst.msk [vmem:[#allocation2 + $0x18] sm:$0xff] %vm26_vm0, %v713_v0 }
   0x3   :  { %31 = vst.msk [vmem:[#allocation3] sm:$0xff] %vm26_vm0, %v713_v0  ;;  %32 = vst.msk [vmem:[#allocation3 + $0x8] sm:$0xff] %vm26_vm0, %v713_v0 }
   0x4   :  { %33 = vst.msk [vmem:[#allocation3 + $0x10] sm:$0xff] %vm26_vm0, %v713_v0  ;;  %34 = vst.msk [vmem:[#allocation3 + $0x18] sm:$0xff] %vm26_vm0, %v713_v0 }
   0x5 LB: > { %v714_v1 = vmov 0.0   ;;  %v49_v2 = vld [vmem:[%s957_s2] sm:$0xff]  ;;  %v51_v3 = vld [vmem:[%s957_s2 + $0x10] sm:$0xff]  ;;  %s646_s29 = sshll.u32 %s707_s24, 3  ;;  %v715_v4 = vmov 0   ;;  %vm88_vm1 = vcmask 1043456   ;;  %s707_s24 = sphi %s767_s24, %s40_s24  }
   0x6   : > { %157 = vmatprep.mubr.f32.mxu0 %v714_v1  ;;  %169 = vmatprep.mubr.f32.mxu1 %v714_v1  ;;  %s43_s9 = scalar_lea.vmem %s955_s0, %s646_s29  ;;  %v45_v7 = vld [vmem:[%s956_s1] sm:$0xff]  ;;  %vm75_vm2 = vcmask 31744   ;;  %v47_v8 = vld [vmem:[%s956_s1 + $0x10] sm:$0xff]  ;;  %v50_v9 = vld [vmem:[%s957_s2 + $0x8] sm:$0xff]  ;;  %s40_s24 = sadd.s32 1, %s707_s24  }
   0x7   : > { %681 = vset.pattern.permute.xlu0 %v715_v4  ;;  %682 = vset.pattern.permute.xlu1 %v715_v4  ;;  %v44_v5 = vld [vmem:[%s43_s9] sm:$0xff]  ;;  %v52_v10 = vld [vmem:[%s957_s2 + $0x18] sm:$0xff]  ;;  %v46_v11 = vld [vmem:[%s956_s1 + $0x8] sm:$0xff]  ;;  %p37_p0 = scmp.ge.s32.totalorder %s40_s24, 2  }
   0x8   : > { %55 = vperm.xlu0 %681, %v49_v2   ;;  %65 = vperm.xlu1 %682, %v51_v3   ;;  %v74_v6 = vcombine.high %v44_v5, %v44_v5  ;;  %v48_v12 = vld [vmem:[%s956_s1 + $0x18] sm:$0xff]  ;;  %v182_v49 = vld [vmem:[#allocation2] sm:$0xff]  ;;  %v183_v57 = vld [vmem:[#allocation2 + $0x8] sm:$0xff]  ;;  %s907_s28 = smov (%p37_p0), 0  }
   0x9   : > { %v184_v54 = vld [vmem:[#allocation2 + $0x10] sm:$0xff]  ;;  %v185_v60 = vld [vmem:[#allocation2 + $0x18] sm:$0xff] }
   0xa   : > { %628 = vmatprep.subr.msk.mxu0 %vm88_vm1, %v74_v6  ;;  %657 = vmatprep.subr.msk.mxu1 %vm88_vm1, %v74_v6  ;;  %v206_v51 = vld [vmem:[#allocation3] sm:$0xff]  ;;  %v207_v2 = vld [vmem:[#allocation3 + $0x8] sm:$0xff] }
   0xb   : > { %629 = vmatpush1.msk.msra.mxu0 %vm88_vm1, %v44_v5  ;;  %658 = vmatpush1.msk.msra.mxu1 %vm88_vm1, %v44_v5  ;;  %v208_v63 = vld [vmem:[#allocation3 + $0x10] sm:$0xff]  ;;  %v209_v6 = vld [vmem:[#allocation3 + $0x18] sm:$0xff] }
   0xc   : > { %630 = vmatmul.mubr.msk.f32.vlgmr.msra.gmra.mrb[0].mxu0 %vm75_vm2, %v45_v7  ;;  %632 = vmatmul.mubr.msk.f32.vlgmr.msra.gmra.mrb[0].mxu1 %vm75_vm2, %v47_v8 }
   0xd   : > { %163 = vmatprep.mubr.f32.mxu0 %v714_v1  ;;  %175 = vmatprep.mubr.f32.mxu1 %v714_v1 }
   0xe   : > { %60 = vperm.xlu0 %681, %v50_v9   ;;  %70 = vperm.xlu1 %682, %v52_v10   ;;  %v822_v9 = vld [vmem:[%s957_s2 + $0x10] sm:$0xff] (%p37_p0) }
  0x10   : > { %631 = vmatmul.mubr.msk.f32.gmra.mrb[2].mxu0 %vm75_vm2, %v46_v11  ;;  %633 = vmatmul.mubr.msk.f32.gmra.mrb[2].mxu1 %vm75_vm2, %v48_v12  ;;  %v716_v11 = vmov (%p37_p0), 0   ;;  %v248_v12 = vmul.f32 (%p37_p0), 0.0, %v822_v9 }
  0x12   :  { %685 = vset.pattern.permute.xlu1 (%p37_p0), %v716_v11  ;;  %684 = vset.pattern.permute.xlu0 (%p37_p0), %v716_v11 }
  0x87   : > { %v66_v13 = vpop.permute.xlu1 %65  ;;  %v56_v14 = vpop.permute.xlu0 %55 }
  0x8d   : > { %v71_v23 = vpop.permute.xlu1 %70  ;;  %v61_v25 = vpop.permute.xlu0 %60 }
  0xdf   : > { %v159_v15 = vpop.f32.mrb[0].mxu0  ;;  %v171_v16 = vpop.f32.mrb[0].mxu1 }
  0xe0   : > { %v160_v17 = vadd.f32 %v159_v15, %v56_v14  ;;  %v161_v18 = vpop.f32.mrb[1].mxu0  ;;  %v172_v19 = vadd.f32 %v171_v16, %v66_v13  ;;  %v173_v20 = vpop.f32.mrb[1].mxu1 }
  0xe1   : > { %v162_v21 = vadd.f32 %v161_v18, %v56_v14  ;;  %v174_v22 = vadd.f32 %v173_v20, %v66_v13  ;;  %v260_v13 = vmul.f32 (%p37_p0), %v822_v9, %v822_v9  ;;  %v830_v14 = vld [vmem:[%s957_s2] sm:$0xff] (%p37_p0) }
  0xe2   : > { %v210_v24 = vmul.f32 %v160_v17, %v160_v17  ;;  %v214_v26 = vmul.f32 %v172_v19, %v172_v19  ;;  %v258_v18 = vmul.f32 (%p37_p0), %v830_v14, %v830_v14 }
  0xe3   : > { %v211_v27 = vmul.f32 %v162_v21, %v162_v21  ;;  %v215_v28 = vmul.f32 %v174_v22, %v174_v22  ;;  %v165_v29 = vpop.f32.mrb[2].mxu0  ;;  %v177_v30 = vpop.f32.mrb[2].mxu1  ;;  %v186_v31 = vadd.f32 %v162_v21, %v160_v17  ;;  %v192_v32 = vadd.f32 %v174_v22, %v172_v19  ;;  %v838_v22 = vld [vmem:[%s957_s2 + $0x18] sm:$0xff] (%p37_p0) }
  0xe4   : > { %v166_v33 = vadd.f32 %v165_v29, %v61_v25  ;;  %v178_v34 = vadd.f32 %v177_v30, %v71_v23  ;;  %v167_v35 = vpop.f32.mrb[3].mxu0  ;;  %v179_v36 = vpop.f32.mrb[3].mxu1  ;;  %v246_v17 = vmul.f32 (%p37_p0), 0.0, %v830_v14  ;;  %v264_v20 = vmul.f32 (%p37_p0), 0.0, %v260_v13 }
  0xe5   : > { %v168_v37 = vadd.f32 %v167_v35, %v61_v25  ;;  %v180_v38 = vadd.f32 %v179_v36, %v71_v23  ;;  %187 = vadd.xlane.f32.xlu0 %v186_v31  ;;  %v218_v39 = vadd.f32 %v211_v27, %v210_v24  ;;  %v224_v40 = vadd.f32 %v215_v28, %v214_v26  ;;  %v846_v31 = vld [vmem:[%s957_s2 + $0x8] sm:$0xff] (%p37_p0) }
  0xe6   : > { %v212_v41 = vmul.f32 %v166_v33, %v166_v33  ;;  %v216_v42 = vmul.f32 %v178_v34, %v178_v34  ;;  %v262_v25 = vmul.f32 (%p37_p0), 0.0, %v258_v18  ;;  %v249_v26 = vmul.f32 (%p37_p0), 0.0, %v838_v22 }
  0xe7   : > { %v213_v43 = vmul.f32 %v168_v37, %v168_v37  ;;  %v217_v44 = vmul.f32 %v180_v38, %v180_v38  ;;  %219 = vadd.xlane.f32.xlu1 %v218_v39  ;;  %v189_v45 = vadd.f32 %v168_v37, %v166_v33  ;;  %v195_v46 = vadd.f32 %v180_v38, %v178_v34 }
  0xe8   :  { %v261_v27 = vmul.f32 (%p37_p0), %v838_v22, %v838_v22  ;;  %v247_v39 = vmul.f32 (%p37_p0), 0.0, %v846_v31 }
  0xe9   : > { %193 = vadd.xlane.f32.xlu0 %v192_v32  ;;  %v221_v47 = vadd.f32 %v213_v43, %v212_v41  ;;  %v227_v48 = vadd.f32 %v217_v44, %v216_v42 }
  0xea   :  { %v265_v35 = vmul.f32 (%p37_p0), 0.0, %v261_v27 }
  0xeb   : > { %190 = vadd.xlane.f32.xlu1 %v189_v45 }
  0xed   : > { %196 = vadd.xlane.f32.xlu0 %v195_v46 }
  0xef   : > { %225 = vadd.xlane.f32.xlu1 %v224_v40  ;;  %v259_v40 = vmul.f32 (%p37_p0), %v846_v31, %v846_v31 }
  0xf1   : > { %222 = vadd.xlane.f32.xlu0 %v221_v47 }
  0xf5   : > { %228 = vadd.xlane.f32.xlu0 %v227_v48  ;;  %v263_v48 = vmul.f32 (%p37_p0), 0.0, %v259_v40 }
 0x172   : > { %v188_v50 = vpop.xlane.xlu0 %187 }
 0x173   : > { %v198_v52 = vadd.f32 %v188_v50, %v182_v49 }
 0x174   : > { %v220_v53 = vpop.xlane.xlu1 %219 }
 0x175   : > { %202 = vst.msk [vmem:[#allocation2] sm:$0xff] %vm26_vm0, %v198_v52  ;;  %v230_v55 = vadd.f32 %v220_v53, %v206_v51 }
 0x176   : > { %v194_v56 = vpop.xlane.xlu0 %193 }
 0x177   : > { %234 = vst.msk [vmem:[#allocation3] sm:$0xff] %vm26_vm0, %v230_v55  ;;  %v200_v58 = vadd.f32 %v194_v56, %v184_v54 }
 0x178   : > { %v191_v59 = vpop.xlane.xlu1 %190 }
 0x179   : > { %204 = vst.msk [vmem:[#allocation2 + $0x10] sm:$0xff] %vm26_vm0, %v200_v58  ;;  %v199_v61 = vadd.f32 %v191_v59, %v183_v57 }
 0x17a   : > { %v197_v62 = vpop.xlane.xlu0 %196 }
 0x17b   : > { %203 = vst.msk [vmem:[#allocation2 + $0x8] sm:$0xff] %vm26_vm0, %v199_v61  ;;  %v201_v0 = vadd.f32 %v197_v62, %v185_v60 }
 0x17c   : > { %v226_v1 = vpop.xlane.xlu1 %225  ;;  %v242_v16 = vld [vmem:[#allocation2] sm:$0xff] (%p37_p0) }
 0x17d   : > { %205 = vst.msk [vmem:[#allocation2 + $0x18] sm:$0xff] %vm26_vm0, %v201_v0  ;;  %v232_v3 = vadd.f32 %v226_v1, %v208_v63  ;;  %v250_v24 = vsub.f32 (%p37_p0), %v242_v16, %v246_v17 }
 0x17e   : > { %v223_v4 = vpop.xlane.xlu0 %222  ;;  %v254_v21 = vld [vmem:[#allocation3] sm:$0xff] (%p37_p0) }
 0x17f   : > { %236 = vst.msk [vmem:[#allocation3 + $0x10] sm:$0xff] %vm26_vm0, %v232_v3  ;;  %v231_v5 = vadd.f32 %v223_v4, %v207_v2  ;;  %39 = sbr.rel (!%p37_p0) target bundleno = 5 (0x5), region = 65  ;;  %v266_v32 = vsub.f32 (%p37_p0), %v254_v21, %v262_v25  ;;  %v270_v33 = vmul.f32 (%p37_p0), 0.001953125, %v250_v24  ;;  %v292_v2 = vld [vmem:[%s958_s3 + $0x10] sm:$0xff] (%p37_p0)  ;;  %v290_v3 = vld [vmem:[%s958_s3] sm:$0xff] (%p37_p0)  ;;  %v309_v21 = vld [vmem:[%s959_s4 + $0x18] sm:$0xff] (%p37_p0) }
 0x180   :  { %v244_v10 = vld [vmem:[#allocation2 + $0x10] sm:$0xff] (%p37_p0) }
 0x181   : > { %235 = vst.msk [vmem:[#allocation3 + $0x8] sm:$0xff] %vm26_vm0, %v231_v5  ;;  %v252_v19 = vsub.f32 (%p37_p0), %v244_v10, %v248_v12  ;;  %v274_v41 = vmul.f32 (%p37_p0), 0.001953125, %v266_v32  ;;  %v278_v42 = vmul.f32 (%p37_p0), %v270_v33, %v270_v33 }
 0x182   : > { %v229_v7 = vpop.xlane.xlu0 %228  ;;  %v243_v36 = vld [vmem:[#allocation2 + $0x8] sm:$0xff] (%p37_p0) }
 0x183   : > { %v233_v8 = vadd.f32 %v229_v7, %v209_v6  ;;  %v272_v29 = vmul.f32 (%p37_p0), 0.001953125, %v252_v19  ;;  %v251_v47 = vsub.f32 (%p37_p0), %v243_v36, %v247_v39  ;;  %v282_v49 = vsub.f32 (%p37_p0), %v274_v41, %v278_v42  ;;  %v293_v7 = vld [vmem:[%s958_s3 + $0x18] sm:$0xff] (%p37_p0)  ;;  %v291_v19 = vld [vmem:[%s958_s3 + $0x8] sm:$0xff] (%p37_p0)  ;;  %v318_v36 = vld [vmem:[%s956_s1] sm:$0xff] (%p37_p0) }
 0x184   :  { %v245_v23 = vld [vmem:[#allocation2 + $0x18] sm:$0xff] (%p37_p0)  ;;  %v319_v42 = vld [vmem:[%s956_s1 + $0x8] sm:$0xff] (%p37_p0) }
 0x185   : > { %237 = vst.msk [vmem:[#allocation3 + $0x18] sm:$0xff] %vm26_vm0, %v233_v8  ;;  %v253_v34 = vsub.f32 (%p37_p0), %v245_v23, %v249_v26  ;;  %v280_v38 = vmul.f32 (%p37_p0), %v272_v29, %v272_v29  ;;  %v271_v54 = vmul.f32 (%p37_p0), 0.001953125, %v251_v47  ;;  %v286_v55 = vmax.f32 (%p37_p0), %v282_v49, 0.0  ;;  %v308_v8 = vld [vmem:[%s959_s4 + $0x10] sm:$0xff] (%p37_p0) }
 0x186   :  { %v256_v15 = vld [vmem:[#allocation3 + $0x10] sm:$0xff] }
 0x187   :  { %v268_v28 = vsub.f32 %v256_v15, %v264_v20  ;;  %v273_v44 = vmul.f32 0.001953125, %v253_v34  ;;  %v279_v59 = vmul.f32 %v271_v54, %v271_v54  ;;  %v294_v60 = vadd.f32 1e-05, %v286_v55  ;;  %v306_v15 = vld [vmem:[%s959_s4] sm:$0xff] }
 0x188   :  { %v255_v45 = vld [vmem:[#allocation3 + $0x8] sm:$0xff] }
 0x189   :  { %v276_v37 = vmul.f32 0.001953125, %v268_v28  ;;  %v281_v51 = vmul.f32 %v273_v44, %v273_v44  ;;  %v267_v53 = vsub.f32 %v255_v45, %v263_v48 }
 0x18b   :  { %v284_v46 = vsub.f32 %v276_v37, %v280_v38  ;;  %v275_v58 = vmul.f32 0.001953125, %v267_v53 }
 0x18c   :  { %v257_v30 = vld [vmem:[#allocation3 + $0x18] sm:$0xff] }
 0x18d   :  { %v269_v43 = vsub.f32 %v257_v30, %v265_v35  ;;  %v288_v52 = vmax.f32 %v284_v46, 0.0  ;;  %v283_v62 = vsub.f32 %v275_v58, %v279_v59 }
 0x18f   :  { %v277_v50 = vmul.f32 0.001953125, %v269_v43  ;;  %v296_v57 = vadd.f32 1e-05, %v288_v52  ;;  %v287_v0 = vmax.f32 %v283_v62, 0.0 }
 0x191   :  { %v285_v56 = vsub.f32 %v277_v50, %v281_v51  ;;  %686 = vrsqrt.f32 %v296_v57  ;;  %v295_v1 = vadd.f32 1e-05, %v287_v0 }
 0x192   :  { %688 = vrsqrt.f32 %v294_v60 }
 0x193   :  { %v289_v61 = vmax.f32 %v285_v56, 0.0 }
 0x195   :  { %v297_v63 = vadd.f32 1e-05, %v289_v61 }
 0x197   :  { %690 = vrsqrt.f32 %v297_v63 }
 0x198   :  { %692 = vrsqrt.f32 %v295_v1 }
 0x19b   :  { %v687_v4 = vpop.eup %686 }
 0x19c   :  { %v689_v5 = vpop.eup %688  ;;  %v304_v6 = vmul.f32 %v687_v4, %v292_v2 }
 0x19d   :  { %v302_v10 = vmul.f32 %v689_v5, %v290_v3 }
 0x19e   :  { %334 = vperm.xlu1 %685, %v304_v6   ;;  %v312_v12 = vmul.f32 %v304_v6, %v272_v29  ;;  %v348_v13 = vmul.f32 %v304_v6, %v822_v9  ;;  %v307_v29 = vld [vmem:[%s959_s4 + $0x8] sm:$0xff] }
 0x19f   :  { %324 = vperm.xlu0 %684, %v302_v10   ;;  %v310_v16 = vmul.f32 %v302_v10, %v270_v33  ;;  %v346_v17 = vmul.f32 %v302_v10, %v830_v14 }
 0x1a0   :  { %v316_v20 = vsub.f32 %v308_v8, %v312_v12 }
 0x1a1   :  { %v691_v11 = vpop.eup %690  ;;  %v314_v9 = vsub.f32 %v306_v15, %v310_v16 }
 0x1a2   :  { %v305_v18 = vmul.f32 %v691_v11, %v293_v7  ;;  %v693_v23 = vpop.eup %692  ;;  %v875_v26 = vadd.f32 %v348_v13, %v316_v20 }
 0x1a3   :  { %v303_v27 = vmul.f32 %v693_v23, %v291_v19  ;;  %v877_v14 = vadd.f32 %v346_v17, %v314_v9 }
 0x1a4   :  { %v313_v24 = vmul.f32 %v305_v18, %v273_v44  ;;  %v349_v25 = vmul.f32 %v305_v18, %v838_v22  ;;  %339 = vperm.xlu1 %685, %v305_v18   ;;  %v320_v22 = vld [vmem:[%s956_s1 + $0x10] sm:$0xff] }
 0x1a5   :  { %v311_v30 = vmul.f32 %v303_v27, %v271_v54  ;;  %v347_v32 = vmul.f32 %v303_v27, %v846_v31  ;;  %329 = vperm.xlu0 %684, %v303_v27   ;;  %v321_v31 = vld [vmem:[%s956_s1 + $0x18] sm:$0xff] }
 0x1a6   :  { %v317_v28 = vsub.f32 %v309_v21, %v313_v24 }
 0x1a7   :  { %v315_v34 = vsub.f32 %v307_v29, %v311_v30 }
 0x1a8   :  { %v883_v33 = vadd.f32 %v349_v25, %v317_v28 }
 0x1a9   :  { %v885_v35 = vadd.f32 %v347_v32, %v315_v34 }
 0x21d   :  { %v335_v37 = vpop.permute.xlu1 %334 }
 0x21e   :  { %v893_v38 = vmul.f32 %v335_v37, %v320_v22  ;;  %v325_v39 = vpop.permute.xlu0 %324 }
 0x21f   :  { %v895_v40 = vmul.f32 %v325_v39, %v318_v36 }
 0x223   :  { %v340_v41 = vpop.permute.xlu1 %339 }
 0x224   :  { %v903_v43 = vmul.f32 %v340_v41, %v321_v31  ;;  %v330_v44 = vpop.permute.xlu0 %329 }
 0x225   :  { %v905_v45 = vmul.f32 %v330_v44, %v319_v42 }
 0x226 LB: > { %v717_v46 = vmov 0.0   ;;  %v718_v47 = vmov 0   ;;  %s647_s29 = sshll.u32 %s711_s28, 3  ;;  %v503_v50 = vld [vmem:[%s961_s6] sm:$0xff]  ;;  %v504_v51 = vld [vmem:[%s961_s6 + $0x8] sm:$0xff]  ;;  %vm515_vm3 = vcmask 261120   ;;  %s711_s28 = sphi %s907_s28, %s359_s28  }
 0x227   : > { %468 = vmatprep.mubr.f32.mxu0 %v717_v46  ;;  %694 = vset.pattern.permute.xlu0 %v718_v47  ;;  %s362_s30 = scalar_lea.vmem %s955_s0, %s647_s29  ;;  %v501_v23 = vld [vmem:[%s960_s5] sm:$0xff]  ;;  %v502_v9 = vld [vmem:[%s960_s5 + $0x8] sm:$0xff]  ;;  %s648_s16 = sshll.u32 %s711_s28, 5 }
 0x228   : > { %366 = vperm.xlu0 %694, %v877_v14   ;;  %695 = vset.pattern.permute.xlu1 %v718_v47  ;;  %v363_v48 = vld [vmem:[%s362_s30] sm:$0xff]  ;;  %s601_s19 = scalar_lea.vmem %s962_s7, %s648_s16  ;;  %s359_s28 = sadd.s32 1, %s711_s28  }
 0x229   : > { %376 = vperm.xlu1 %695, %v875_v26   ;;  %586 = vmatprep.mubr.f32.mxu1 %v717_v46  ;;  %v385_v49 = vcombine.high %v363_v48, %v363_v48  ;;  %p356_p1 = scmp.ge.s32.totalorder %s359_s28, 2  }
 0x22b   : > { %636 = vmatprep.subr.msk.mxu0 %vm88_vm1, %v385_v49 }
 0x22c   : > { %371 = vperm.xlu0 %694, %v885_v35   ;;  %637 = vmatpush1.msk.msra.mxu0 %vm88_vm1, %v363_v48 }
 0x22d   : > { %381 = vperm.xlu1 %695, %v883_v33   ;;  %638 = vmatmul.mubr.msk.f32.vlgmr.msra.gmra.mrb[0].mxu0 %vm75_vm2, %v895_v40 }
 0x22e   : > { %474 = vmatprep.mubr.f32.mxu0 %v717_v46 }
 0x230   : > { %507 = vperm.xlu0 %694, %v503_v50  }
 0x231   : > { %512 = vperm.xlu1 %695, %v504_v51   ;;  %639 = vmatmul.mubr.msk.f32.gmra.mrb[2].mxu0 %vm75_vm2, %v905_v45 }
 0x232   : > { %480 = vmatprep.mubr.f32.mxu0 %v717_v46 }
 0x235   : > { %640 = vmatmul.mubr.msk.f32.gmra.mrb[4].mxu0 %vm75_vm2, %v893_v38 }
 0x236   : > { %486 = vmatprep.mubr.f32.mxu0 %v717_v46 }
 0x239   : > { %641 = vmatmul.mubr.msk.f32.gmra.mrb[6].mxu0 %vm75_vm2, %v903_v43 }
 0x2a7   : > { %v367_v52 = vpop.permute.xlu0 %366 }
 0x2a8   : > { %v377_v61 = vpop.permute.xlu1 %376 }
 0x2ab   : > { %v372_v56 = vpop.permute.xlu0 %371 }
 0x2ac   : > { %v382_v8 = vpop.permute.xlu1 %381 }
 0x2af   : > { %v508_v24 = vpop.permute.xlu0 %507 }
 0x2b0   : > { %v513_v30 = vpop.permute.xlu1 %512 }
 0x300   : > { %v470_v53 = vpop.f32.mrb[0].mxu0 }
 0x301   : > { %v472_v54 = vpop.f32.mrb[1].mxu0  ;;  %v471_v55 = vadd.f32 %v470_v53, %v367_v52 }
 0x302   : > { %v473_v57 = vadd.f32 %v472_v54, %v367_v52 }
 0x303   : > { %v493_v63 = vmax.f32 %v471_v55, 0.0 }
 0x304   : > { %v476_v58 = vpop.f32.mrb[2].mxu0  ;;  %v494_v1 = vmax.f32 %v473_v57, 0.0 }
 0x305   : > { %v477_v59 = vadd.f32 %v476_v58, %v372_v56  ;;  %v478_v60 = vpop.f32.mrb[3].mxu0 }
 0x306   : > { %v479_v62 = vadd.f32 %v478_v60, %v372_v56 }
 0x307   : > { %v495_v0 = vmax.f32 %v477_v59, 0.0 }
 0x308   : > { %v496_v2 = vmax.f32 %v479_v62, 0.0  ;;  %v482_v3 = vpop.f32.mrb[4].mxu0 }
 0x309   : > { %v484_v4 = vpop.f32.mrb[5].mxu0  ;;  %v651_v5 = vpack.c.bf16 %v495_v0, %v493_v63  ;;  %v483_v7 = vadd.f32 %v482_v3, %v377_v61 }
 0x30a   : > { %v649_v6 = vpack.c.bf16 %v496_v2, %v494_v1  ;;  %v485_v10 = vadd.f32 %v484_v4, %v377_v61 }
 0x30b   : > { %v497_v16 = vmax.f32 %v483_v7, 0.0 }
 0x30c   : > { %v488_v11 = vpop.f32.mrb[6].mxu0  ;;  %650 = vmatprep.subr.bf16.mxu1 %v649_v6  ;;  %v498_v18 = vmax.f32 %v485_v10, 0.0 }
 0x30d   : > { %v489_v12 = vadd.f32 %v488_v11, %v382_v8  ;;  %v490_v13 = vpop.f32.mrb[7].mxu0  ;;  %652 = vmatpush1.bf16.msra.mxu1 %v651_v5 }
 0x30e   : > { %v491_v15 = vadd.f32 %v490_v13, %v382_v8 }
 0x30f   : > { %v499_v17 = vmax.f32 %v489_v12, 0.0 }
 0x310   : > { %v500_v19 = vmax.f32 %v491_v15, 0.0 }
 0x311   : > { %v655_v20 = vpack.c.bf16 %v499_v17, %v497_v16 }
 0x312   : > { %v653_v21 = vpack.c.bf16 %v500_v19, %v498_v18 }
 0x314   : > { %654 = vmatprep.subr.bf16.mxu1 %v653_v21 }
 0x315   : > { %656 = vmatpush1.bf16.msra.mxu1 %v655_v20 }
 0x318   : > { %642 = vmatmul.mubr.msk.f32.vlgmr.msra.gmra.mrb[0].mxu1 %vm515_vm3, %v501_v23 }
 0x319   : > { %592 = vmatprep.mubr.f32.mxu1 %v717_v46 }
 0x31c   : > { %643 = vmatmul.mubr.msk.f32.gmra.mrb[2].mxu1 %vm515_vm3, %v502_v9 }
 0x3eb   : > { %v588_v25 = vpop.f32.mrb[0].mxu1 }
 0x3ec   : > { %v589_v27 = vadd.f32 %v588_v25, %v508_v24  ;;  %v590_v28 = vpop.f32.mrb[1].mxu1 }
 0x3ed   : > { %v591_v29 = vadd.f32 %v590_v28, %v508_v24  ;;  %358 = sbr.rel (!%p356_p1) target bundleno = 550 (0x226), region = 76 }
 0x3ee   : > { %602 = vst [vmem:[%s601_s19] sm:$0xff] %v589_v27 }
 0x3ef   : > { %603 = vst [vmem:[%s601_s19 + $0x8] sm:$0xff] %v591_v29  ;;  %v594_v32 = vpop.f32.mrb[2].mxu1 }
 0x3f0   : > { %v595_v34 = vadd.f32 %v594_v32, %v513_v30  ;;  %v596_v22 = vpop.f32.mrb[3].mxu1 }
 0x3f1   : > { %v597_v36 = vadd.f32 %v596_v22, %v513_v30 }
 0x3f2   : > { %604 = vst [vmem:[%s601_s19 + $0x10] sm:$0xff] %v595_v34 }
 0x3f3   : > { %605 = vst [vmem:[%s601_s19 + $0x18] sm:$0xff] %v597_v36 }

</bundles_post_ra>
